<compile_context>
chip_gen: v6e
topology: v6e:2x2x1
jax: 0.10.0
libtpu: 0.0.40
codegen_flags: <defaults>
</compile_context>

<pallas_src>
import functools

import jax
import jax.numpy as jnp
from jax.experimental import pallas as pl
from jax.experimental.pallas import tpu as pltpu


# ---------------------------------------------------------------------------
# Fused Pallas kernel: MBGraphConvolutionalNetwork + MFFusionModule +
# RegressionNetwork.  Single invocation, everything VMEM resident.
# ---------------------------------------------------------------------------
def _mstsdn_fused_kernel(xt_ref, adjt_ref, wgt_ref, wf_ref,
                         w1_ref, b1_ref, w2_ref, b2_ref, w3_ref, b3_ref,
                         out_ref, map_ref, flat_scr,
                         *, scales, B, nodes, seq, h2):
    # ---- MBGCN graph conv, per scale, batched over B along rows --------------
    # TODO(synk): BGraphConvolutionalNetwork was not provided in the source;
    # stand-in is the shape-preserving graph conv h = relu(A @ X) @ Wg.
    # Computed in transposed orientation G_s = relu(A_s @ X_b)^T for the whole
    # batch at once (rows are (b, q)), so the hot loop needs no transposes.
    g = []   # each (B*seq, nodes)
    m = []   # each (seq, seq):  M_s = Wf_s @ Wg_s^T  (BGCN weight folded into fusion weight)
    for s in range(scales):                      # static unroll (scales == 3)
        g.append(jnp.maximum(
            jnp.dot(xt_ref[s], adjt_ref[s], preferred_element_type=jnp.float32),
            0.0))
        m.append(jnp.dot(wf_ref[s], wgt_ref[s], preferred_element_type=jnp.float32))

    # ---- MFFusionModule: out_b = sum_s Wf_s @ h_{s,b}^T == sum_s M_s @ G_{s,b}
    # followed by the row-major flatten [seq, nodes] -> [seq*nodes], written
    # lane-dense into the VMEM scratch (no HBM round trip, no second dispatch).
    for b in range(B):                           # static unroll (B == 2)
        acc = jnp.dot(m[0], g[0][b * seq:(b + 1) * seq, :],
                      preferred_element_type=jnp.float32)          # (seq, nodes)
        for s in range(1, scales):
            acc = acc + jnp.dot(m[s], g[s][b * seq:(b + 1) * seq, :],
                                preferred_element_type=jnp.float32)
        # nn.Flatten(start_dim=-2): row q of (seq, nodes) -> lanes [q*nodes, (q+1)*nodes)
        for q in range(seq):
            flat_scr[b:b + 1, q * nodes:(q + 1) * nodes] = acc[q:q + 1, :]

    # ---- RegressionNetwork (dropout == identity at inference) ----------------
    x_flat = flat_scr[...]                                          # (B, 128) lane dense
    h1 = jnp.maximum(
        jnp.dot(x_flat, w1_ref[...], preferred_element_type=jnp.float32)
        + b1_ref[...], 0.0)                                         # (B, 256)
    h2p = jnp.maximum(
        jnp.dot(h1, w2_ref[...], preferred_element_type=jnp.float32)
        + b2_ref[...], 0.0)                                         # (B, 128) padded
    map_ref[...] = h2p[:, :h2]                                      # un-pad to true H2
    out_ref[...] = (jnp.dot(h2p, w3_ref[...], preferred_element_type=jnp.float32)
                    + b3_ref[...])                                  # (B, 1)


def mstsdn_fused(xt, adjt, wgt, wf, w1, b1, w2, b2, w3, b3,
                 *, B, nodes, seq, h2_dim):
    scales = xt.shape[0]
    F = seq * nodes
    H1 = w1.shape[1]
    H2P = w2.shape[1]

    args = (xt, adjt, wgt, wf, w1, b1, w2, b2, w3, b3)
    flops = (scales * (2 * (B * seq) * nodes * nodes        # relu(A @ X), batched
                       + 2 * seq * seq * seq)               # M_s = Wf_s @ Wg_s^T
             + B * scales * 2 * seq * seq * nodes           # fusion accumulation
             + 2 * B * (F * H1 + H1 * H2P + H2P))           # regression MLP
    bytes_accessed = (sum(int(a.size) * a.dtype.itemsize for a in args)
                      + B * 4 + B * h2_dim * 4)

    vmem = pltpu.MemorySpace.VMEM
    kernel = functools.partial(_mstsdn_fused_kernel, scales=scales, B=B,
                               nodes=nodes, seq=seq, h2=h2_dim)
    return pl.pallas_call(
        kernel,
        out_shape=(jax.ShapeDtypeStruct((B, 1), jnp.float32),
                   jax.ShapeDtypeStruct((B, h2_dim), jnp.float32)),
        in_specs=[pl.BlockSpec(memory_space=vmem) for _ in args],
        out_specs=(pl.BlockSpec(memory_space=vmem),
                   pl.BlockSpec(memory_space=vmem)),
        scratch_shapes=[pltpu.VMEM((B, F), jnp.float32)],
        cost_estimate=pl.CostEstimate(flops=flops, transcendentals=0,
                                      bytes_accessed=bytes_accessed),
    )(*args)


# ---------------------------------------------------------------------------
# Plain-JAX glue for sub-modules whose definitions were not provided.
# ---------------------------------------------------------------------------
def pmtt_forward(x, layer_params):
    # TODO(synk): STFeatureExtractionLayer (windowed spatio-temporal transformer
    # block) was not provided; shape-preserving residual MLP stand-in per layer.
    outs = []
    for (wl, bl) in layer_params:
        x = x + jnp.maximum(jnp.einsum("bns,st->bnt", x, wl) + bl, 0.0)
        outs.append(x)
    return outs


def gsl_forward(e1, e2):
    # TODO(synk): AdaptiveGraphStructureLearningModule was not provided; common
    # adaptive-adjacency construction softmax(relu(E1 @ E2^T)).
    logits = jnp.maximum(e1 @ e2.T, 0.0)
    return jax.nn.softmax(logits, axis=-1)


# ---------------------------------------------------------------------------
# Parameter construction (deterministic, in-script).
# ---------------------------------------------------------------------------
def init_params(key, *, nodes, seq, scales, adj_dim, r_mlp_ratio):
    keys = jax.random.split(key, 12)
    p = {}
    # PMTT stand-in layers
    p["pmtt"] = [
        (0.1 * jax.random.normal(keys[i], (seq, seq), jnp.float32),
         jnp.zeros((seq,), jnp.float32))
        for i in range(scales)
    ]
    # GSL embeddings per scale
    p["gsl_e1"] = jax.random.normal(keys[4], (scales, nodes, adj_dim), jnp.float32)
    p["gsl_e2"] = jax.random.normal(keys[5], (scales, nodes, adj_dim), jnp.float32)
    # BGCN weights per scale (stand-in)
    p["wg"] = 0.1 * jax.random.normal(keys[6], (scales, seq, seq), jnp.float32)
    # MFFusionModule weights_list: xavier_normal_, shape [scales, seq, seq]
    xavier_std = (2.0 / (seq + seq)) ** 0.5
    p["wf"] = xavier_std * jax.random.normal(keys[7], (scales, seq, seq), jnp.float32)
    # RegressionNetwork.  H2 is zero-padded up to the 128-lane boundary so every
    # in-kernel matmul is lane dense; padding is mathematically a no-op (padded
    # w2 columns, b2 entries and w3 rows are zero) and the kernel slices the
    # true H2 back out for out_mappings.
    F = nodes * seq
    H1 = int(r_mlp_ratio * F)
    H2 = int(0.3 * r_mlp_ratio * F)
    H2P = ((H2 + 127) // 128) * 128
    p["w1"] = (1.0 / F) ** 0.5 * jax.random.normal(keys[8], (F, H1), jnp.float32)
    p["b1"] = jnp.zeros((1, H1), jnp.float32)
    w2 = (1.0 / H1) ** 0.5 * jax.random.normal(keys[9], (H1, H2), jnp.float32)
    p["w2"] = jnp.pad(w2, ((0, 0), (0, H2P - H2)))
    p["b2"] = jnp.zeros((1, H2P), jnp.float32)
    w3 = (1.0 / H2) ** 0.5 * jax.random.normal(keys[10], (H2, 1), jnp.float32)
    p["w3"] = jnp.pad(w3, ((0, H2P - H2), (0, 0)))
    p["b3"] = jnp.zeros((1, 1), jnp.float32)
    return p


def mstsdn_forward(x, params, *, h2_dim):
    # x: [B, nodes, seq]
    # 1) PMTTransformer -> one mapping per window size (cascaded layers).
    mappings_list = pmtt_forward(x, params["pmtt"])
    x_stack = jnp.stack(mappings_list, axis=0)           # [scales, B, nodes, seq]
    scales, B, nodes, seq = x_stack.shape

    # 2) Adaptive graph structure learning (plain JAX stand-in), per scale.
    adjs = jax.vmap(gsl_forward)(params["gsl_e1"], params["gsl_e2"])  # [scales, nodes, nodes]
    adj_one = adjs[1]

    # Orientation fix-ups done once on the wrapper side (they fuse into the
    # producing XLA ops): x presented in (seq, nodes) orientation, adjacency and
    # BGCN weight pre-transposed, so the kernel contains zero transposes.
    xt = jnp.swapaxes(x_stack, -1, -2).reshape(scales, B * seq, nodes)
    adjt = jnp.swapaxes(adjs, -1, -2)
    wgt = jnp.swapaxes(params["wg"], -1, -2)

    # 3) Single fused Pallas kernel: MBGCN + MFFusion + RegressionNetwork.
    out, out_mappings = mstsdn_fused(
        xt, adjt, wgt, params["wf"],
        params["w1"], params["b1"], params["w2"], params["b2"],
        params["w3"], params["b3"],
        B=B, nodes=nodes, seq=seq, h2_dim=h2_dim)
    return out, out_mappings, adj_one


if __name__ == "__main__":
    # Small but consistent hyper-params
    B, nodes, seq = 2, 8, 16
    window_sizes = [2, 4, 8]          # scales = 3
    adj_dim = 4
    r_mlp_ratio = 2.0
    scales = len(window_sizes)
    H2 = int(0.3 * r_mlp_ratio * nodes * seq)    # 76

    key = jax.random.PRNGKey(0)
    k_x, k_p = jax.random.split(key)
    x = jax.random.normal(k_x, (B, nodes, seq), jnp.float32)
    params = init_params(k_p, nodes=nodes, seq=seq, scales=scales,
                         adj_dim=adj_dim, r_mlp_ratio=r_mlp_ratio)

    fwd = jax.jit(mstsdn_forward, static_argnames=("h2_dim",))
    out, out_mappings, adj_one = fwd(x, params, h2_dim=H2)
    jax.block_until_ready((out, out_mappings, adj_one))

    assert out.shape == (B, 1)
    assert out_mappings.shape == (B, H2)
    assert adj_one.shape == (nodes, nodes)
    print("KERNEL_OK")
</pallas_src>

<mosaic_0001>
module attributes {stable_mosaic.version = 11 : i64} {
  func.func @_mstsdn_fused_kernel(%arg0: memref<3x32x8xf32, #tpu.memory_space<vmem>>, %arg1: memref<3x8x8xf32, #tpu.memory_space<vmem>>, %arg2: memref<3x16x16xf32, #tpu.memory_space<vmem>>, %arg3: memref<3x16x16xf32, #tpu.memory_space<vmem>>, %arg4: memref<128x256xf32, #tpu.memory_space<vmem>>, %arg5: memref<1x256xf32, #tpu.memory_space<vmem>>, %arg6: memref<256x128xf32, #tpu.memory_space<vmem>>, %arg7: memref<1x128xf32, #tpu.memory_space<vmem>>, %arg8: memref<128x1xf32, #tpu.memory_space<vmem>>, %arg9: memref<1x1xf32, #tpu.memory_space<vmem>>, %arg10: memref<2x1xf32, #tpu.memory_space<vmem>>, %arg11: memref<2x76xf32, #tpu.memory_space<vmem>>, %arg12: memref<2x128xf32, #tpu.memory_space<vmem>>) attributes {dimension_semantics = [], scalar_prefetch = 0 : i64, scratch_operands = 1 : i64, tpu.core_type = #tpu.core_type<tc>} {
    %c0 = arith.constant 0 : index
    %c0_0 = arith.constant 0 : index
    %c0_1 = arith.constant 0 : index
    %0 = vector.load %arg0[%c0, %c0_0, %c0_1] : memref<3x32x8xf32, #tpu.memory_space<vmem>>, vector<1x32x8xf32>
    %1 = vector.shape_cast %0 : vector<1x32x8xf32> to vector<32x8xf32>
    %c0_2 = arith.constant 0 : index
    %c0_3 = arith.constant 0 : index
    %c0_4 = arith.constant 0 : index
    %2 = vector.load %arg1[%c0_2, %c0_3, %c0_4] : memref<3x8x8xf32, #tpu.memory_space<vmem>>, vector<1x8x8xf32>
    %3 = vector.shape_cast %2 : vector<1x8x8xf32> to vector<8x8xf32>
    %cst = arith.constant dense<0.000000e+00> : vector<32x8xf32>
    %4 = tpu.matmul %1, %3, %cst {dimension_numbers = #tpu.dot_dimension_numbers<[1], [0], [0], [1], [0, 0, 1, 1], [], []>} : vector<32x8xf32>, vector<8x8xf32>, vector<32x8xf32> -> vector<32x8xf32>
    %cst_5 = arith.constant 0.000000e+00 : f32
    %5 = vector.broadcast %cst_5 : f32 to vector<32x8xf32>
    %6 = arith.maximumf %4, %5 : vector<32x8xf32>
    %c0_6 = arith.constant 0 : index
    %c0_7 = arith.constant 0 : index
    %c0_8 = arith.constant 0 : index
    %7 = vector.load %arg3[%c0_6, %c0_7, %c0_8] : memref<3x16x16xf32, #tpu.memory_space<vmem>>, vector<1x16x16xf32>
    %8 = vector.shape_cast %7 : vector<1x16x16xf32> to vector<16x16xf32>
    %c0_9 = arith.constant 0 : index
    %c0_10 = arith.constant 0 : index
    %c0_11 = arith.constant 0 : index
    %9 = vector.load %arg2[%c0_9, %c0_10, %c0_11] : memref<3x16x16xf32, #tpu.memory_space<vmem>>, vector<1x16x16xf32>
    %10 = vector.shape_cast %9 : vector<1x16x16xf32> to vector<16x16xf32>
    %cst_12 = arith.constant dense<0.000000e+00> : vector<16x16xf32>
    %11 = tpu.matmul %8, %10, %cst_12 {dimension_numbers = #tpu.dot_dimension_numbers<[1], [0], [0], [1], [0, 0, 1, 1], [], []>} : vector<16x16xf32>, vector<16x16xf32>, vector<16x16xf32> -> vector<16x16xf32>
    %c1 = arith.constant 1 : index
    %c0_13 = arith.constant 0 : index
    %c0_14 = arith.constant 0 : index
    %12 = vector.load %arg0[%c1, %c0_13, %c0_14] : memref<3x32x8xf32, #tpu.memory_space<vmem>>, vector<1x32x8xf32>
    %13 = vector.shape_cast %12 : vector<1x32x8xf32> to vector<32x8xf32>
    %c1_15 = arith.constant 1 : index
    %c0_16 = arith.constant 0 : index
    %c0_17 = arith.constant 0 : index
    %14 = vector.load %arg1[%c1_15, %c0_16, %c0_17] : memref<3x8x8xf32, #tpu.memory_space<vmem>>, vector<1x8x8xf32>
    %15 = vector.shape_cast %14 : vector<1x8x8xf32> to vector<8x8xf32>
    %cst_18 = arith.constant dense<0.000000e+00> : vector<32x8xf32>
    %16 = tpu.matmul %13, %15, %cst_18 {dimension_numbers = #tpu.dot_dimension_numbers<[1], [0], [0], [1], [0, 0, 1, 1], [], []>} : vector<32x8xf32>, vector<8x8xf32>, vector<32x8xf32> -> vector<32x8xf32>
    %cst_19 = arith.constant 0.000000e+00 : f32
    %17 = vector.broadcast %cst_19 : f32 to vector<32x8xf32>
    %18 = arith.maximumf %16, %17 : vector<32x8xf32>
    %c1_20 = arith.constant 1 : index
    %c0_21 = arith.constant 0 : index
    %c0_22 = arith.constant 0 : index
    %19 = vector.load %arg3[%c1_20, %c0_21, %c0_22] : memref<3x16x16xf32, #tpu.memory_space<vmem>>, vector<1x16x16xf32>
    %20 = vector.shape_cast %19 : vector<1x16x16xf32> to vector<16x16xf32>
    %c1_23 = arith.constant 1 : index
    %c0_24 = arith.constant 0 : index
    %c0_25 = arith.constant 0 : index
    %21 = vector.load %arg2[%c1_23, %c0_24, %c0_25] : memref<3x16x16xf32, #tpu.memory_space<vmem>>, vector<1x16x16xf32>
    %22 = vector.shape_cast %21 : vector<1x16x16xf32> to vector<16x16xf32>
    %cst_26 = arith.constant dense<0.000000e+00> : vector<16x16xf32>
    %23 = tpu.matmul %20, %22, %cst_26 {dimension_numbers = #tpu.dot_dimension_numbers<[1], [0], [0], [1], [0, 0, 1, 1], [], []>} : vector<16x16xf32>, vector<16x16xf32>, vector<16x16xf32> -> vector<16x16xf32>
    %c2 = arith.constant 2 : index
    %c0_27 = arith.constant 0 : index
    %c0_28 = arith.constant 0 : index
    %24 = vector.load %arg0[%c2, %c0_27, %c0_28] : memref<3x32x8xf32, #tpu.memory_space<vmem>>, vector<1x32x8xf32>
    %25 = vector.shape_cast %24 : vector<1x32x8xf32> to vector<32x8xf32>
    %c2_29 = arith.constant 2 : index
    %c0_30 = arith.constant 0 : index
    %c0_31 = arith.constant 0 : index
    %26 = vector.load %arg1[%c2_29, %c0_30, %c0_31] : memref<3x8x8xf32, #tpu.memory_space<vmem>>, vector<1x8x8xf32>
    %27 = vector.shape_cast %26 : vector<1x8x8xf32> to vector<8x8xf32>
    %cst_32 = arith.constant dense<0.000000e+00> : vector<32x8xf32>
    %28 = tpu.matmul %25, %27, %cst_32 {dimension_numbers = #tpu.dot_dimension_numbers<[1], [0], [0], [1], [0, 0, 1, 1], [], []>} : vector<32x8xf32>, vector<8x8xf32>, vector<32x8xf32> -> vector<32x8xf32>
    %cst_33 = arith.constant 0.000000e+00 : f32
    %29 = vector.broadcast %cst_33 : f32 to vector<32x8xf32>
    %30 = arith.maximumf %28, %29 : vector<32x8xf32>
    %c2_34 = arith.constant 2 : index
    %c0_35 = arith.constant 0 : index
    %c0_36 = arith.constant 0 : index
    %31 = vector.load %arg3[%c2_34, %c0_35, %c0_36] : memref<3x16x16xf32, #tpu.memory_space<vmem>>, vector<1x16x16xf32>
    %32 = vector.shape_cast %31 : vector<1x16x16xf32> to vector<16x16xf32>
    %c2_37 = arith.constant 2 : index
    %c0_38 = arith.constant 0 : index
    %c0_39 = arith.constant 0 : index
    %33 = vector.load %arg2[%c2_37, %c0_38, %c0_39] : memref<3x16x16xf32, #tpu.memory_space<vmem>>, vector<1x16x16xf32>
    %34 = vector.shape_cast %33 : vector<1x16x16xf32> to vector<16x16xf32>
    %cst_40 = arith.constant dense<0.000000e+00> : vector<16x16xf32>
    %35 = tpu.matmul %32, %34, %cst_40 {dimension_numbers = #tpu.dot_dimension_numbers<[1], [0], [0], [1], [0, 0, 1, 1], [], []>} : vector<16x16xf32>, vector<16x16xf32>, vector<16x16xf32> -> vector<16x16xf32>
    %36 = vector.extract_strided_slice %6 {offsets = [0, 0], sizes = [16, 8], strides = [1, 1]} : vector<32x8xf32> to vector<16x8xf32>
    %cst_41 = arith.constant dense<0.000000e+00> : vector<16x8xf32>
    %37 = tpu.matmul %11, %36, %cst_41 {dimension_numbers = #tpu.dot_dimension_numbers<[1], [0], [0], [1], [0, 0, 1, 1], [], []>} : vector<16x16xf32>, vector<16x8xf32>, vector<16x8xf32> -> vector<16x8xf32>
    %38 = vector.extract_strided_slice %18 {offsets = [0, 0], sizes = [16, 8], strides = [1, 1]} : vector<32x8xf32> to vector<16x8xf32>
    %cst_42 = arith.constant dense<0.000000e+00> : vector<16x8xf32>
    %39 = tpu.matmul %23, %38, %cst_42 {dimension_numbers = #tpu.dot_dimension_numbers<[1], [0], [0], [1], [0, 0, 1, 1], [], []>} : vector<16x16xf32>, vector<16x8xf32>, vector<16x8xf32> -> vector<16x8xf32>
    %40 = arith.addf %37, %39 : vector<16x8xf32>
    %41 = vector.extract_strided_slice %30 {offsets = [0, 0], sizes = [16, 8], strides = [1, 1]} : vector<32x8xf32> to vector<16x8xf32>
    %cst_43 = arith.constant dense<0.000000e+00> : vector<16x8xf32>
    %42 = tpu.matmul %35, %41, %cst_43 {dimension_numbers = #tpu.dot_dimension_numbers<[1], [0], [0], [1], [0, 0, 1, 1], [], []>} : vector<16x16xf32>, vector<16x8xf32>, vector<16x8xf32> -> vector<16x8xf32>
    %43 = arith.addf %40, %42 : vector<16x8xf32>
    %44 = vector.extract_strided_slice %43 {offsets = [0, 0], sizes = [1, 8], strides = [1, 1]} : vector<16x8xf32> to vector<1x8xf32>
    %c0_44 = arith.constant 0 : index
    %c0_45 = arith.constant 0 : index
    %45 = vector.load %arg12[%c0_44, %c0_45] : memref<2x128xf32, #tpu.memory_space<vmem>>, vector<1x8xf32>
    tpu.vector_store %arg12[%c0_44, %c0_45], %44 {strides = array<i32>} : memref<2x128xf32, #tpu.memory_space<vmem>>, vector<1x8xf32>,
    %46 = vector.extract_strided_slice %43 {offsets = [1, 0], sizes = [1, 8], strides = [1, 1]} : vector<16x8xf32> to vector<1x8xf32>
    %c0_46 = arith.constant 0 : index
    %c8 = arith.constant 8 : index
    %47 = vector.load %arg12[%c0_46, %c8] : memref<2x128xf32, #tpu.memory_space<vmem>>, vector<1x8xf32>
    tpu.vector_store %arg12[%c0_46, %c8], %46 {strides = array<i32>} : memref<2x128xf32, #tpu.memory_space<vmem>>, vector<1x8xf32>,
    %48 = vector.extract_strided_slice %43 {offsets = [2, 0], sizes = [1, 8], strides = [1, 1]} : vector<16x8xf32> to vector<1x8xf32>
    %c0_47 = arith.constant 0 : index
    %c16 = arith.constant 16 : index
    %49 = vector.load %arg12[%c0_47, %c16] : memref<2x128xf32, #tpu.memory_space<vmem>>, vector<1x8xf32>
    tpu.vector_store %arg12[%c0_47, %c16], %48 {strides = array<i32>} : memref<2x128xf32, #tpu.memory_space<vmem>>, vector<1x8xf32>,
    %50 = vector.extract_strided_slice %43 {offsets = [3, 0], sizes = [1, 8], strides = [1, 1]} : vector<16x8xf32> to vector<1x8xf32>
    %c0_48 = arith.constant 0 : index
    %c24 = arith.constant 24 : index
    %51 = vector.load %arg12[%c0_48, %c24] : memref<2x128xf32, #tpu.memory_space<vmem>>, vector<1x8xf32>
    tpu.vector_store %arg12[%c0_48, %c24], %50 {strides = array<i32>} : memref<2x128xf32, #tpu.memory_space<vmem>>, vector<1x8xf32>,
    %52 = vector.extract_strided_slice %43 {offsets = [4, 0], sizes = [1, 8], strides = [1, 1]} : vector<16x8xf32> to vector<1x8xf32>
    %c0_49 = arith.constant 0 : index
    %c32 = arith.constant 32 : index
    %53 = vector.load %arg12[%c0_49, %c32] : memref<2x128xf32, #tpu.memory_space<vmem>>, vector<1x8xf32>
    tpu.vector_store %arg12[%c0_49, %c32], %52 {strides = array<i32>} : memref<2x128xf32, #tpu.memory_space<vmem>>, vector<1x8xf32>,
    %54 = vector.extract_strided_slice %43 {offsets = [5, 0], sizes = [1, 8], strides = [1, 1]} : vector<16x8xf32> to vector<1x8xf32>
    %c0_50 = arith.constant 0 : index
    %c40 = arith.constant 40 : index
    %55 = vector.load %arg12[%c0_50, %c40] : memref<2x128xf32, #tpu.memory_space<vmem>>, vector<1x8xf32>
    tpu.vector_store %arg12[%c0_50, %c40], %54 {strides = array<i32>} : memref<2x128xf32, #tpu.memory_space<vmem>>, vector<1x8xf32>,
    %56 = vector.extract_strided_slice %43 {offsets = [6, 0], sizes = [1, 8], strides = [1, 1]} : vector<16x8xf32> to vector<1x8xf32>
    %c0_51 = arith.constant 0 : index
    %c48 = arith.constant 48 : index
    %57 = vector.load %arg12[%c0_51, %c48] : memref<2x128xf32, #tpu.memory_space<vmem>>, vector<1x8xf32>
    tpu.vector_store %arg12[%c0_51, %c48], %56 {strides = array<i32>} : memref<2x128xf32, #tpu.memory_space<vmem>>, vector<1x8xf32>,
    %58 = vector.extract_strided_slice %43 {offsets = [7, 0], sizes = [1, 8], strides = [1, 1]} : vector<16x8xf32> to vector<1x8xf32>
    %c0_52 = arith.constant 0 : index
    %c56 = arith.constant 56 : index
    %59 = vector.load %arg12[%c0_52, %c56] : memref<2x128xf32, #tpu.memory_space<vmem>>, vector<1x8xf32>
    tpu.vector_store %arg12[%c0_52, %c56], %58 {strides = array<i32>} : memref<2x128xf32, #tpu.memory_space<vmem>>, vector<1x8xf32>,
    %60 = vector.extract_strided_slice %43 {offsets = [8, 0], sizes = [1, 8], strides = [1, 1]} : vector<16x8xf32> to vector<1x8xf32>
    %c0_53 = arith.constant 0 : index
    %c64 = arith.constant 64 : index
    %61 = vector.load %arg12[%c0_53, %c64] : memref<2x128xf32, #tpu.memory_space<vmem>>, vector<1x8xf32>
    tpu.vector_store %arg12[%c0_53, %c64], %60 {strides = array<i32>} : memref<2x128xf32, #tpu.memory_space<vmem>>, vector<1x8xf32>,
    %62 = vector.extract_strided_slice %43 {offsets = [9, 0], sizes = [1, 8], strides = [1, 1]} : vector<16x8xf32> to vector<1x8xf32>
    %c0_54 = arith.constant 0 : index
    %c72 = arith.constant 72 : index
    %63 = vector.load %arg12[%c0_54, %c72] : memref<2x128xf32, #tpu.memory_space<vmem>>, vector<1x8xf32>
    tpu.vector_store %arg12[%c0_54, %c72], %62 {strides = array<i32>} : memref<2x128xf32, #tpu.memory_space<vmem>>, vector<1x8xf32>,
    %64 = vector.extract_strided_slice %43 {offsets = [10, 0], sizes = [1, 8], strides = [1, 1]} : vector<16x8xf32> to vector<1x8xf32>
    %c0_55 = arith.constant 0 : index
    %c80 = arith.constant 80 : index
    %65 = vector.load %arg12[%c0_55, %c80] : memref<2x128xf32, #tpu.memory_space<vmem>>, vector<1x8xf32>
    tpu.vector_store %arg12[%c0_55, %c80], %64 {strides = array<i32>} : memref<2x128xf32, #tpu.memory_space<vmem>>, vector<1x8xf32>,
    %66 = vector.extract_strided_slice %43 {offsets = [11, 0], sizes = [1, 8], strides = [1, 1]} : vector<16x8xf32> to vector<1x8xf32>
    %c0_56 = arith.constant 0 : index
    %c88 = arith.constant 88 : index
    %67 = vector.load %arg12[%c0_56, %c88] : memref<2x128xf32, #tpu.memory_space<vmem>>, vector<1x8xf32>
    tpu.vector_store %arg12[%c0_56, %c88], %66 {strides = array<i32>} : memref<2x128xf32, #tpu.memory_space<vmem>>, vector<1x8xf32>,
    %68 = vector.extract_strided_slice %43 {offsets = [12, 0], sizes = [1, 8], strides = [1, 1]} : vector<16x8xf32> to vector<1x8xf32>
    %c0_57 = arith.constant 0 : index
    %c96 = arith.constant 96 : index
    %69 = vector.load %arg12[%c0_57, %c96] : memref<2x128xf32, #tpu.memory_space<vmem>>, vector<1x8xf32>
    tpu.vector_store %arg12[%c0_57, %c96], %68 {strides = array<i32>} : memref<2x128xf32, #tpu.memory_space<vmem>>, vector<1x8xf32>,
    %70 = vector.extract_strided_slice %43 {offsets = [13, 0], sizes = [1, 8], strides = [1, 1]} : vector<16x8xf32> to vector<1x8xf32>
    %c0_58 = arith.constant 0 : index
    %c104 = arith.constant 104 : index
    %71 = vector.load %arg12[%c0_58, %c104] : memref<2x128xf32, #tpu.memory_space<vmem>>, vector<1x8xf32>
    tpu.vector_store %arg12[%c0_58, %c104], %70 {strides = array<i32>} : memref<2x128xf32, #tpu.memory_space<vmem>>, vector<1x8xf32>,
    %72 = vector.extract_strided_slice %43 {offsets = [14, 0], sizes = [1, 8], strides = [1, 1]} : vector<16x8xf32> to vector<1x8xf32>
    %c0_59 = arith.constant 0 : index
    %c112 = arith.constant 112 : index
    %73 = vector.load %arg12[%c0_59, %c112] : memref<2x128xf32, #tpu.memory_space<vmem>>, vector<1x8xf32>
    tpu.vector_store %arg12[%c0_59, %c112], %72 {strides = array<i32>} : memref<2x128xf32, #tpu.memory_space<vmem>>, vector<1x8xf32>,
    %74 = vector.extract_strided_slice %43 {offsets = [15, 0], sizes = [1, 8], strides = [1, 1]} : vector<16x8xf32> to vector<1x8xf32>
    %c0_60 = arith.constant 0 : index
    %c120 = arith.constant 120 : index
    %75 = vector.load %arg12[%c0_60, %c120] : memref<2x128xf32, #tpu.memory_space<vmem>>, vector<1x8xf32>
    tpu.vector_store %arg12[%c0_60, %c120], %74 {strides = array<i32>} : memref<2x128xf32, #tpu.memory_space<vmem>>, vector<1x8xf32>,
    %76 = vector.extract_strided_slice %6 {offsets = [16, 0], sizes = [16, 8], strides = [1, 1]} : vector<32x8xf32> to vector<16x8xf32>
    %cst_61 = arith.constant dense<0.000000e+00> : vector<16x8xf32>
    %77 = tpu.matmul %11, %76, %cst_61 {dimension_numbers = #tpu.dot_dimension_numbers<[1], [0], [0], [1], [0, 0, 1, 1], [], []>} : vector<16x16xf32>, vector<16x8xf32>, vector<16x8xf32> -> vector<16x8xf32>
    %78 = vector.extract_strided_slice %18 {offsets = [16, 0], sizes = [16, 8], strides = [1, 1]} : vector<32x8xf32> to vector<16x8xf32>
    %cst_62 = arith.constant dense<0.000000e+00> : vector<16x8xf32>
    %79 = tpu.matmul %23, %78, %cst_62 {dimension_numbers = #tpu.dot_dimension_numbers<[1], [0], [0], [1], [0, 0, 1, 1], [], []>} : vector<16x16xf32>, vector<16x8xf32>, vector<16x8xf32> -> vector<16x8xf32>
    %80 = arith.addf %77, %79 : vector<16x8xf32>
    %81 = vector.extract_strided_slice %30 {offsets = [16, 0], sizes = [16, 8], strides = [1, 1]} : vector<32x8xf32> to vector<16x8xf32>
    %cst_63 = arith.constant dense<0.000000e+00> : vector<16x8xf32>
    %82 = tpu.matmul %35, %81, %cst_63 {dimension_numbers = #tpu.dot_dimension_numbers<[1], [0], [0], [1], [0, 0, 1, 1], [], []>} : vector<16x16xf32>, vector<16x8xf32>, vector<16x8xf32> -> vector<16x8xf32>
    %83 = arith.addf %80, %82 : vector<16x8xf32>
    %84 = vector.extract_strided_slice %83 {offsets = [0, 0], sizes = [1, 8], strides = [1, 1]} : vector<16x8xf32> to vector<1x8xf32>
    %c1_64 = arith.constant 1 : index
    %c0_65 = arith.constant 0 : index
    %85 = vector.load %arg12[%c1_64, %c0_65] : memref<2x128xf32, #tpu.memory_space<vmem>>, vector<1x8xf32>
    tpu.vector_store %arg12[%c1_64, %c0_65], %84 {strides = array<i32>} : memref<2x128xf32, #tpu.memory_space<vmem>>, vector<1x8xf32>,
    %86 = vector.extract_strided_slice %83 {offsets = [1, 0], sizes = [1, 8], strides = [1, 1]} : vector<16x8xf32> to vector<1x8xf32>
    %c1_66 = arith.constant 1 : index
    %c8_67 = arith.constant 8 : index
    %87 = vector.load %arg12[%c1_66, %c8_67] : memref<2x128xf32, #tpu.memory_space<vmem>>, vector<1x8xf32>
    tpu.vector_store %arg12[%c1_66, %c8_67], %86 {strides = array<i32>} : memref<2x128xf32, #tpu.memory_space<vmem>>, vector<1x8xf32>,
    %88 = vector.extract_strided_slice %83 {offsets = [2, 0], sizes = [1, 8], strides = [1, 1]} : vector<16x8xf32> to vector<1x8xf32>
    %c1_68 = arith.constant 1 : index
    %c16_69 = arith.constant 16 : index
    %89 = vector.load %arg12[%c1_68, %c16_69] : memref<2x128xf32, #tpu.memory_space<vmem>>, vector<1x8xf32>
    tpu.vector_store %arg12[%c1_68, %c16_69], %88 {strides = array<i32>} : memref<2x128xf32, #tpu.memory_space<vmem>>, vector<1x8xf32>,
    %90 = vector.extract_strided_slice %83 {offsets = [3, 0], sizes = [1, 8], strides = [1, 1]} : vector<16x8xf32> to vector<1x8xf32>
    %c1_70 = arith.constant 1 : index
    %c24_71 = arith.constant 24 : index
    %91 = vector.load %arg12[%c1_70, %c24_71] : memref<2x128xf32, #tpu.memory_space<vmem>>, vector<1x8xf32>
    tpu.vector_store %arg12[%c1_70, %c24_71], %90 {strides = array<i32>} : memref<2x128xf32, #tpu.memory_space<vmem>>, vector<1x8xf32>,
    %92 = vector.extract_strided_slice %83 {offsets = [4, 0], sizes = [1, 8], strides = [1, 1]} : vector<16x8xf32> to vector<1x8xf32>
    %c1_72 = arith.constant 1 : index
    %c32_73 = arith.constant 32 : index
    %93 = vector.load %arg12[%c1_72, %c32_73] : memref<2x128xf32, #tpu.memory_space<vmem>>, vector<1x8xf32>
    tpu.vector_store %arg12[%c1_72, %c32_73], %92 {strides = array<i32>} : memref<2x128xf32, #tpu.memory_space<vmem>>, vector<1x8xf32>,
    %94 = vector.extract_strided_slice %83 {offsets = [5, 0], sizes = [1, 8], strides = [1, 1]} : vector<16x8xf32> to vector<1x8xf32>
    %c1_74 = arith.constant 1 : index
    %c40_75 = arith.constant 40 : index
    %95 = vector.load %arg12[%c1_74, %c40_75] : memref<2x128xf32, #tpu.memory_space<vmem>>, vector<1x8xf32>
    tpu.vector_store %arg12[%c1_74, %c40_75], %94 {strides = array<i32>} : memref<2x128xf32, #tpu.memory_space<vmem>>, vector<1x8xf32>,
    %96 = vector.extract_strided_slice %83 {offsets = [6, 0], sizes = [1, 8], strides = [1, 1]} : vector<16x8xf32> to vector<1x8xf32>
    %c1_76 = arith.constant 1 : index
    %c48_77 = arith.constant 48 : index
    %97 = vector.load %arg12[%c1_76, %c48_77] : memref<2x128xf32, #tpu.memory_space<vmem>>, vector<1x8xf32>
    tpu.vector_store %arg12[%c1_76, %c48_77], %96 {strides = array<i32>} : memref<2x128xf32, #tpu.memory_space<vmem>>, vector<1x8xf32>,
    %98 = vector.extract_strided_slice %83 {offsets = [7, 0], sizes = [1, 8], strides = [1, 1]} : vector<16x8xf32> to vector<1x8xf32>
    %c1_78 = arith.constant 1 : index
    %c56_79 = arith.constant 56 : index
    %99 = vector.load %arg12[%c1_78, %c56_79] : memref<2x128xf32, #tpu.memory_space<vmem>>, vector<1x8xf32>
    tpu.vector_store %arg12[%c1_78, %c56_79], %98 {strides = array<i32>} : memref<2x128xf32, #tpu.memory_space<vmem>>, vector<1x8xf32>,
    %100 = vector.extract_strided_slice %83 {offsets = [8, 0], sizes = [1, 8], strides = [1, 1]} : vector<16x8xf32> to vector<1x8xf32>
    %c1_80 = arith.constant 1 : index
    %c64_81 = arith.constant 64 : index
    %101 = vector.load %arg12[%c1_80, %c64_81] : memref<2x128xf32, #tpu.memory_space<vmem>>, vector<1x8xf32>
    tpu.vector_store %arg12[%c1_80, %c64_81], %100 {strides = array<i32>} : memref<2x128xf32, #tpu.memory_space<vmem>>, vector<1x8xf32>,
    %102 = vector.extract_strided_slice %83 {offsets = [9, 0], sizes = [1, 8], strides = [1, 1]} : vector<16x8xf32> to vector<1x8xf32>
    %c1_82 = arith.constant 1 : index
    %c72_83 = arith.constant 72 : index
    %103 = vector.load %arg12[%c1_82, %c72_83] : memref<2x128xf32, #tpu.memory_space<vmem>>, vector<1x8xf32>
    tpu.vector_store %arg12[%c1_82, %c72_83], %102 {strides = array<i32>} : memref<2x128xf32, #tpu.memory_space<vmem>>, vector<1x8xf32>,
    %104 = vector.extract_strided_slice %83 {offsets = [10, 0], sizes = [1, 8], strides = [1, 1]} : vector<16x8xf32> to vector<1x8xf32>
    %c1_84 = arith.constant 1 : index
    %c80_85 = arith.constant 80 : index
    %105 = vector.load %arg12[%c1_84, %c80_85] : memref<2x128xf32, #tpu.memory_space<vmem>>, vector<1x8xf32>
    tpu.vector_store %arg12[%c1_84, %c80_85], %104 {strides = array<i32>} : memref<2x128xf32, #tpu.memory_space<vmem>>, vector<1x8xf32>,
    %106 = vector.extract_strided_slice %83 {offsets = [11, 0], sizes = [1, 8], strides = [1, 1]} : vector<16x8xf32> to vector<1x8xf32>
    %c1_86 = arith.constant 1 : index
    %c88_87 = arith.constant 88 : index
    %107 = vector.load %arg12[%c1_86, %c88_87] : memref<2x128xf32, #tpu.memory_space<vmem>>, vector<1x8xf32>
    tpu.vector_store %arg12[%c1_86, %c88_87], %106 {strides = array<i32>} : memref<2x128xf32, #tpu.memory_space<vmem>>, vector<1x8xf32>,
    %108 = vector.extract_strided_slice %83 {offsets = [12, 0], sizes = [1, 8], strides = [1, 1]} : vector<16x8xf32> to vector<1x8xf32>
    %c1_88 = arith.constant 1 : index
    %c96_89 = arith.constant 96 : index
    %109 = vector.load %arg12[%c1_88, %c96_89] : memref<2x128xf32, #tpu.memory_space<vmem>>, vector<1x8xf32>
    tpu.vector_store %arg12[%c1_88, %c96_89], %108 {strides = array<i32>} : memref<2x128xf32, #tpu.memory_space<vmem>>, vector<1x8xf32>,
    %110 = vector.extract_strided_slice %83 {offsets = [13, 0], sizes = [1, 8], strides = [1, 1]} : vector<16x8xf32> to vector<1x8xf32>
    %c1_90 = arith.constant 1 : index
    %c104_91 = arith.constant 104 : index
    %111 = vector.load %arg12[%c1_90, %c104_91] : memref<2x128xf32, #tpu.memory_space<vmem>>, vector<1x8xf32>
    tpu.vector_store %arg12[%c1_90, %c104_91], %110 {strides = array<i32>} : memref<2x128xf32, #tpu.memory_space<vmem>>, vector<1x8xf32>,
    %112 = vector.extract_strided_slice %83 {offsets = [14, 0], sizes = [1, 8], strides = [1, 1]} : vector<16x8xf32> to vector<1x8xf32>
    %c1_92 = arith.constant 1 : index
    %c112_93 = arith.constant 112 : index
    %113 = vector.load %arg12[%c1_92, %c112_93] : memref<2x128xf32, #tpu.memory_space<vmem>>, vector<1x8xf32>
    tpu.vector_store %arg12[%c1_92, %c112_93], %112 {strides = array<i32>} : memref<2x128xf32, #tpu.memory_space<vmem>>, vector<1x8xf32>,
    %114 = vector.extract_strided_slice %83 {offsets = [15, 0], sizes = [1, 8], strides = [1, 1]} : vector<16x8xf32> to vector<1x8xf32>
    %c1_94 = arith.constant 1 : index
    %c120_95 = arith.constant 120 : index
    %115 = vector.load %arg12[%c1_94, %c120_95] : memref<2x128xf32, #tpu.memory_space<vmem>>, vector<1x8xf32>
    tpu.vector_store %arg12[%c1_94, %c120_95], %114 {strides = array<i32>} : memref<2x128xf32, #tpu.memory_space<vmem>>, vector<1x8xf32>,
    %c0_96 = arith.constant 0 : index
    %c0_97 = arith.constant 0 : index
    %116 = vector.load %arg12[%c0_96, %c0_97] : memref<2x128xf32, #tpu.memory_space<vmem>>, vector<2x128xf32>
    %c0_98 = arith.constant 0 : index
    %c0_99 = arith.constant 0 : index
    %117 = vector.load %arg4[%c0_98, %c0_99] : memref<128x256xf32, #tpu.memory_space<vmem>>, vector<128x256xf32>
    %cst_100 = arith.constant dense<0.000000e+00> : vector<2x256xf32>
    %118 = tpu.matmul %116, %117, %cst_100 {dimension_numbers = #tpu.dot_dimension_numbers<[1], [0], [0], [1], [0, 0, 1, 1], [], []>} : vector<2x128xf32>, vector<128x256xf32>, vector<2x256xf32> -> vector<2x256xf32>
    %c0_101 = arith.constant 0 : index
    %c0_102 = arith.constant 0 : index
    %119 = vector.load %arg5[%c0_101, %c0_102] : memref<1x256xf32, #tpu.memory_space<vmem>>, vector<1x256xf32>
    %120 = vector.broadcast %119 : vector<1x256xf32> to vector<2x256xf32>
    %121 = arith.addf %118, %120 : vector<2x256xf32>
    %cst_103 = arith.constant 0.000000e+00 : f32
    %122 = vector.broadcast %cst_103 : f32 to vector<2x256xf32>
    %123 = arith.maximumf %121, %122 : vector<2x256xf32>
    %c0_104 = arith.constant 0 : index
    %c0_105 = arith.constant 0 : index
    %124 = vector.load %arg6[%c0_104, %c0_105] : memref<256x128xf32, #tpu.memory_space<vmem>>, vector<256x128xf32>
    %cst_106 = arith.constant dense<0.000000e+00> : vector<2x128xf32>
    %125 = tpu.matmul %123, %124, %cst_106 {dimension_numbers = #tpu.dot_dimension_numbers<[1], [0], [0], [1], [0, 0, 1, 1], [], []>} : vector<2x256xf32>, vector<256x128xf32>, vector<2x128xf32> -> vector<2x128xf32>
    %c0_107 = arith.constant 0 : index
    %c0_108 = arith.constant 0 : index
    %126 = vector.load %arg7[%c0_107, %c0_108] : memref<1x128xf32, #tpu.memory_space<vmem>>, vector<1x128xf32>
    %127 = vector.broadcast %126 : vector<1x128xf32> to vector<2x128xf32>
    %128 = arith.addf %125, %127 : vector<2x128xf32>
    %cst_109 = arith.constant 0.000000e+00 : f32
    %129 = vector.broadcast %cst_109 : f32 to vector<2x128xf32>
    %130 = arith.maximumf %128, %129 : vector<2x128xf32>
    %131 = vector.extract_strided_slice %130 {offsets = [0, 0], sizes = [2, 76], strides = [1, 1]} : vector<2x128xf32> to vector<2x76xf32>
    %c0_110 = arith.constant 0 : index
    %c0_111 = arith.constant 0 : index
    %132 = vector.load %arg11[%c0_110, %c0_111] : memref<2x76xf32, #tpu.memory_space<vmem>>, vector<2x76xf32>
    tpu.vector_store %arg11[%c0_110, %c0_111], %131 {strides = array<i32>} : memref<2x76xf32, #tpu.memory_space<vmem>>, vector<2x76xf32>,
    %c0_112 = arith.constant 0 : index
    %c0_113 = arith.constant 0 : index
    %133 = vector.load %arg8[%c0_112, %c0_113] : memref<128x1xf32, #tpu.memory_space<vmem>>, vector<128x1xf32>
    %cst_114 = arith.constant dense<0.000000e+00> : vector<2x1xf32>
    %134 = tpu.matmul %130, %133, %cst_114 {dimension_numbers = #tpu.dot_dimension_numbers<[1], [0], [0], [1], [0, 0, 1, 1], [], []>} : vector<2x128xf32>, vector<128x1xf32>, vector<2x1xf32> -> vector<2x1xf32>
    %c0_115 = arith.constant 0 : index
    %c0_116 = arith.constant 0 : index
    %135 = vector.load %arg9[%c0_115, %c0_116] : memref<1x1xf32, #tpu.memory_space<vmem>>, vector<1x1xf32>
    %136 = vector.broadcast %135 : vector<1x1xf32> to vector<2x1xf32>
    %137 = arith.addf %134, %136 : vector<2x1xf32>
    %c0_117 = arith.constant 0 : index
    %c0_118 = arith.constant 0 : index
    %138 = vector.load %arg10[%c0_117, %c0_118] : memref<2x1xf32, #tpu.memory_space<vmem>>, vector<2x1xf32>
    tpu.vector_store %arg10[%c0_117, %c0_118], %137 {strides = array<i32>} : memref<2x1xf32, #tpu.memory_space<vmem>>, vector<2x1xf32>,
    return
  }
}

</mosaic_0001>

<bundles_post_ra>
// kernel: mstsdn_forward.1
= control target key start
LH: loop header
LB: loop body
LE: loop exit
PB: predicated region body
PF: predicated region fallthrough
CT: control target
= control target key end

     0   :  { %s2443_s0 = inlined_call_operand.vmem [shape: f32[3,32,8], index: 0, kind: input, shape index: {}]   ;;  %s2444_s1 = inlined_call_operand.vmem [shape: f32[3,8,8], index: 1, kind: input, shape index: {}]   ;;  %s2445_s2 = inlined_call_operand.vmem [shape: f32[3,16,16], index: 2, kind: input, shape index: {}]   ;;  %s2446_s3 = inlined_call_operand.vmem [shape: f32[3,16,16], index: 3, kind: input, shape index: {}]   ;;  %s2447_s4 = inlined_call_operand.vmem [shape: f32[128,256], index: 4, kind: input, shape index: {}]   ;;  %s2448_s5 = inlined_call_operand.vmem [shape: f32[1,256], index: 5, kind: input, shape index: {}]   ;;  %s2449_s6 = inlined_call_operand.vmem [shape: f32[256,128], index: 6, kind: input, shape index: {}]   ;;  %s2450_s7 = inlined_call_operand.vmem [shape: f32[1,128], index: 7, kind: input, shape index: {}]   ;;  %s2451_s8 = inlined_call_operand.vmem [shape: f32[128,1], index: 8, kind: input, shape index: {}]   ;;  %s2452_s9 = inlined_call_operand.<no memory space> [shape: f32[1,1], index: 9, kind: input, shape index: {}]   ;;  %s2453_s10 = inlined_call_operand.vmem [shape: f32[2,1], index: 10, kind: output, shape index: {0}]   ;;  %s2454_s11 = inlined_call_operand.hbm [shape: f32[2,76], index: 11, kind: output, shape index: {1}]  }
   0x1   :  { %v17_v0 = vstv %s2452_s9 }
   0x2   :  { %18 = vst [vmem:[#allocation3] sm:$0x1] %v17_v0 }
   0x3   :  { %v44_v1 = vld [vmem:[%s2444_s1] sm:$0xff]  ;;  %vm45_vm0 = vcmask 64512   ;;  %v41_v3 = vld [vmem:[%s2443_s0 + $0x8] sm:$0xff]  ;;  %v42_v5 = vld [vmem:[%s2443_s0 + $0x10] sm:$0xff]  ;;  %vm151_vm1 = vcmask 130048  }
   0x4   :  { %v40_v2 = vld [vmem:[%s2443_s0] sm:$0xff]  ;;  %1733 = vmatprep.subr.mxu0 %v44_v1  ;;  %v150_v4 = vld [vmem:[%s2445_s2 + $0x8] sm:$0xff]  ;;  %v43_v7 = vld [vmem:[%s2443_s0 + $0x18] sm:$0xff] }
   0x5   :  { %1735 = vmatprep.mubr.msk.f32.mxu0 %vm45_vm0, %v40_v2  ;;  %1734 = vmatpush3.msra.mxu0 %v44_v1  ;;  %v149_v6 = vld [vmem:[%s2445_s2] sm:$0xff]  ;;  %v1590_v8 = vld [vmem:[%s2444_s1 + $0x8] sm:$0xff] }
   0x6   :  { %1736 = vmatmul.mubr.msk.f32.vlgmr.msra.gmra.mxu0 %vm45_vm0, %v41_v3  ;;  %1741 = vmatprep.subr.mxu0 %v150_v4  ;;  %v147_v9 = vld [vmem:[%s2446_s3] sm:$0xff]  ;;  %v148_v10 = vld [vmem:[%s2446_s3 + $0x8] sm:$0xff] }
   0x7   :  { %1742 = vmatpush3.msra.mxu0 %v150_v4  ;;  %1738 = vmatprep.mubr.msk.f32.mxu0 %vm45_vm0, %v42_v5  ;;  %v1586_v11 = vld [vmem:[%s2443_s0 + $0x20] sm:$0xff] }
   0x8   :  { %1743 = vmatprep.subr.mxu0 %v149_v6 }
   0x9   :  { %1744 = vmatpush3.msra.mxu0 %v149_v6 }
   0xa   :  { %1739 = vmatmul.mubr.msk.f32.gmra.mxu0 %vm45_vm0, %v43_v7  ;;  %1748 = vmatprep.subr.mxu0 %v1590_v8 }
   0xb   :  { %1745 = vmatprep.mubr.msk.f32.mxu0 %vm151_vm1, %v147_v9 }
   0xc   :  { %19 = vsyncpa [#allocation5], 0  ;;  %v1598_v12 = vld [vmem:[%s2445_s2 + $0x18] sm:$0xff]  ;;  %v1587_v13 = vld [vmem:[%s2443_s0 + $0x28] sm:$0xff]  ;;  %vm868_vm2 = vcmask 57344   ;;  %s1897_s30 = smov 72  }
   0xd   :  { %v1588_v14 = vld [vmem:[%s2443_s0 + $0x30] sm:$0xff]  ;;  %v1589_v16 = vld [vmem:[%s2443_s0 + $0x38] sm:$0xff]  ;;  %v1601_v20 = vld [vmem:[%s2443_s0 + $0x40] sm:$0xff]  ;;  %s1898_s12 = smov 80   ;;  %s1899_s13 = smov 88   ;;  %vm874_vm3 = vcmask 123969  }
   0xe   :  { %1746 = vmatmul.mubr.msk.f32.vlgmr.msra.gmra.mxu0 %vm151_vm1, %v148_v10  ;;  %v1597_v15 = vld [vmem:[%s2445_s2 + $0x10] sm:$0xff]  ;;  %v1596_v19 = vld [vmem:[%s2446_s3 + $0x18] sm:$0xff]  ;;  %v1613_v21 = vld [vmem:[%s2445_s2 + $0x28] sm:$0xff]  ;;  %s1900_s14 = smov 8   ;;  %s1901_s15 = smov 24   ;;  %vm879_vm4 = vcmask 190594  }
   0xf   :  { %1749 = vmatpush3.msra.mxu0 %v1590_v8  ;;  %1750 = vmatprep.mubr.msk.f32.mxu0 %vm45_vm0, %v1586_v11  ;;  %v1605_v17 = vld [vmem:[%s2444_s1 + $0x10] sm:$0xff]  ;;  %v1602_v22 = vld [vmem:[%s2443_s0 + $0x48] sm:$0xff]  ;;  %v1612_v24 = vld [vmem:[%s2445_s2 + $0x20] sm:$0xff]  ;;  %s1902_s18 = smov 96   ;;  %s1903_s22 = smov 32   ;;  %vm884_vm5 = vcmask 257219  }
  0x10   :  { %1756 = vmatprep.subr.mxu0 %v1598_v12  ;;  %v1595_v18 = vld [vmem:[%s2446_s3 + $0x10] sm:$0xff]  ;;  %v1604_v25 = vld [vmem:[%s2443_s0 + $0x58] sm:$0xff]  ;;  %v1610_v26 = vld [vmem:[%s2446_s3 + $0x20] sm:$0xff]  ;;  %s1904_s28 = smov 104   ;;  %s1906_s24 = smov 48   ;;  %vm889_vm6 = vcmask 323844  }
  0x11   :  { %v1603_v23 = vld [vmem:[%s2443_s0 + $0x50] sm:$0xff]  ;;  %v1611_v27 = vld [vmem:[%s2446_s3 + $0x28] sm:$0xff]  ;;  %s1895_s0 = smov 64   ;;  %s1896_s3 = smov 16   ;;  %vm894_vm7 = vcmask 390469   ;;  %vm899_vm8 = vcmask 457094  }
  0x12   :  { %1751 = vmatmul.mubr.msk.f32.vlgmr.msra.gmra.mxu0 %vm45_vm0, %v1587_v13  ;;  %s1910_s29 = smov 120   ;;  %vm904_vm9 = vcmask 523719   ;;  %vm910_vm10 = vcmask 582144   ;;  %vm915_vm11 = vcmask 648769   ;;  %vm920_vm12 = vcmask 715394   ;;  %s1912_s23 = smov [#allocation4]  }
  0x13   :  { %1757 = vmatpush3.msra.mxu0 %v1598_v12  ;;  %1753 = vmatprep.mubr.msk.f32.mxu0 %vm45_vm0, %v1588_v14  ;;  %v1269_v14 = vld [vmem:[%s2447_s4 + $0xf8] sm:$0xff]  ;;  %vm925_vm13 = vcmask 782019   ;;  %vm930_vm14 = vcmask 848644   ;;  %vm935_vm15 = vcmask 915269  }
  0x14   :  { %1758 = vmatprep.subr.mxu0 %v1597_v15 }
  0x15   :  { %1759 = vmatpush3.msra.mxu0 %v1597_v15  ;;  %v1268_v15 = vld [vmem:[%s2447_s4 + $0xf0] sm:$0xff] }
  0x16   :  { %1754 = vmatmul.mubr.msk.f32.gmra.mxu0 %vm45_vm0, %v1589_v16  ;;  %1763 = vmatprep.subr.mxu0 %v1605_v17  ;;  %v1267_v16 = vld [vmem:[%s2447_s4 + $0xe8] sm:$0xff] }
  0x17   :  { %1760 = vmatprep.mubr.msk.f32.mxu0 %vm151_vm1, %v1595_v18  ;;  %v1265_v18 = vld [vmem:[%s2447_s4 + $0xd8] sm:$0xff] }
  0x1a   :  { %1761 = vmatmul.mubr.msk.f32.vlgmr.msra.gmra.mxu0 %vm151_vm1, %v1596_v19  ;;  %v1264_v19 = vld [vmem:[%s2447_s4 + $0xd0] sm:$0xff] }
  0x1b   :  { %1764 = vmatpush3.msra.mxu0 %v1605_v17  ;;  %1765 = vmatprep.mubr.msk.f32.mxu0 %vm45_vm0, %v1601_v20  ;;  %v1266_v17 = vld [vmem:[%s2447_s4 + $0xe0] sm:$0xff]  ;;  %v1263_v20 = vld [vmem:[%s2447_s4 + $0xc8] sm:$0xff] }
  0x1c   :  { %1771 = vmatprep.subr.mxu0 %v1613_v21 }
  0x1e   :  { %1766 = vmatmul.mubr.msk.f32.vlgmr.msra.gmra.mxu0 %vm45_vm0, %v1602_v22  ;;  %v1261_v22 = vld [vmem:[%s2447_s4 + $0xb8] sm:$0xff] }
  0x1f   :  { %1772 = vmatpush3.msra.mxu0 %v1613_v21  ;;  %1768 = vmatprep.mubr.msk.f32.mxu0 %vm45_vm0, %v1603_v23  ;;  %v1262_v21 = vld [vmem:[%s2447_s4 + $0xc0] sm:$0xff]  ;;  %v1260_v23 = vld [vmem:[%s2447_s4 + $0xb0] sm:$0xff] }
  0x20   :  { %1773 = vmatprep.subr.mxu0 %v1612_v24 }
  0x21   :  { %1774 = vmatpush3.msra.mxu0 %v1612_v24  ;;  %v1259_v24 = vld [vmem:[%s2447_s4 + $0xa8] sm:$0xff] }
  0x22   :  { %1769 = vmatmul.mubr.msk.f32.gmra.mxu0 %vm45_vm0, %v1604_v25  ;;  %v1258_v25 = vld [vmem:[%s2447_s4 + $0xa0] sm:$0xff]  ;;  %vm940_vm0 = vcmask 981894  }
  0x23   :  { %1775 = vmatprep.mubr.msk.f32.mxu0 %vm151_vm1, %v1610_v26  ;;  %v1257_v26 = vld [vmem:[%s2447_s4 + $0x98] sm:$0xff] }
  0x26   :  { %1776 = vmatmul.mubr.msk.f32.vlgmr.msra.gmra.mxu0 %vm151_vm1, %v1611_v27  ;;  %v1256_v27 = vld [vmem:[%s2447_s4 + $0x90] sm:$0xff] }
  0xc6   :  { %v1737_v28 = vpop.f32.mrf.mxu0 }
  0xc7   :  { %v144_v29 = vmax.f32 %v1737_v28, 0.0  ;;  %v1255_v28 = vld [vmem:[%s2447_s4 + $0x88] sm:$0xff] }
  0xc8   :  { %v124_v30 = vpop.f32.mrf.mxu0 }
  0xc9   :  { %v143_v31 = vmax.f32 %v124_v30, 0.0  ;;  %1785 = vmatprep.subr.mxu0 %v144_v29  ;;  %v1253_v30 = vld [vmem:[%s2447_s4 + $0x78] sm:$0xff] }
  0xca   :  { %v1740_v32 = vpop.f32.mrf.mxu0  ;;  %1786 = vmatpush3.msra.mxu0 %v144_v29  ;;  %v1254_v29 = vld [vmem:[%s2447_s4 + $0x80] sm:$0xff] }
  0xcb   :  { %1787 = vmatprep.subr.mxu0 %v143_v31  ;;  %v146_v51 = vmax.f32 %v1740_v32, 0.0  ;;  %v1251_v32 = vld [vmem:[%s2447_s4 + $0x68] sm:$0xff] }
  0xcc   :  { %v134_v33 = vpop.f32.mrf.mxu0  ;;  %1788 = vmatpush3.msra.mxu0 %v143_v31  ;;  %v1252_v31 = vld [vmem:[%s2447_s4 + $0x70] sm:$0xff] }
  0xcd   :  { %v145_v57 = vmax.f32 %v134_v33, 0.0  ;;  %v1250_v33 = vld [vmem:[%s2447_s4 + $0x60] sm:$0xff] }
  0xce   :  { %v1747_v34 = vpop.f32.mrf.mxu0 }
  0xd0   :  { %v224_v35 = vpop.f32.mrf.mxu0 }
  0xd1   :  { %1789 = vmatprep.mubr.msk.f32.mxu0 %vm151_vm1, %v224_v35 }
  0xd2   :  { %v1752_v36 = vpop.f32.mrf.mxu0  ;;  %1790 = vmatmul.mubr.msk.f32.vlgmr.msra.gmra.mxu0 %vm151_vm1, %v1747_v34 }
  0xd3   :  { %v338_v37 = vmax.f32 %v1752_v36, 0.0  ;;  %v1247_v36 = vld [vmem:[%s2447_s4 + $0x48] sm:$0xff] }
  0xd4   :  { %v318_v38 = vpop.f32.mrf.mxu0 }
  0xd5   :  { %v337_v39 = vmax.f32 %v318_v38, 0.0  ;;  %1778 = vmatprep.subr.mxu1 %v338_v37  ;;  %v1245_v38 = vld [vmem:[%s2447_s4 + $0x38] sm:$0xff] }
  0xd6   :  { %v1755_v40 = vpop.f32.mrf.mxu0  ;;  %1779 = vmatpush3.msra.mxu1 %v338_v37  ;;  %v1246_v37 = vld [vmem:[%s2447_s4 + $0x40] sm:$0xff] }
  0xd7   :  { %v340_v41 = vmax.f32 %v1755_v40, 0.0  ;;  %1780 = vmatprep.subr.mxu1 %v337_v39  ;;  %v1243_v40 = vld [vmem:[%s2447_s4 + $0x28] sm:$0xff] }
  0xd8   :  { %v328_v42 = vpop.f32.mrf.mxu0  ;;  %1781 = vmatpush3.msra.mxu1 %v337_v39  ;;  %v1244_v39 = vld [vmem:[%s2447_s4 + $0x30] sm:$0xff] }
  0xd9   :  { %v339_v43 = vmax.f32 %v328_v42, 0.0  ;;  %1799 = vmatprep.subr.mxu0 %v340_v41  ;;  %v1241_v42 = vld [vmem:[%s2447_s4 + $0x18] sm:$0xff] }
  0xda   :  { %v1762_v44 = vpop.f32.mrf.mxu0  ;;  %1800 = vmatpush3.msra.mxu0 %v340_v41  ;;  %v1242_v41 = vld [vmem:[%s2447_s4 + $0x20] sm:$0xff] }
  0xdb   :  { %1801 = vmatprep.subr.mxu0 %v339_v43 }
  0xdc   :  { %v419_v45 = vpop.f32.mrf.mxu0  ;;  %1802 = vmatpush3.msra.mxu0 %v339_v43  ;;  %v1908_v43 = vmov 0.0  }
  0xdd   :  { %1782 = vmatprep.mubr.msk.f32.mxu1 %vm151_vm1, %v419_v45  ;;  %1803 = vmatprep.mubr.msk.f32.mxu0 %vm151_vm1, %v419_v45  ;;  %v1239_v45 = vld [vmem:[%s2447_s4 + $0x8] sm:$0xff] }
  0xde   :  { %v1767_v46 = vpop.f32.mrf.mxu0  ;;  %1783 = vmatmul.mubr.msk.f32.vlgmr.msra.gmra.mxu1 %vm151_vm1, %v1762_v44  ;;  %1804 = vmatmul.mubr.msk.f32.vlgmr.msra.gmra.mxu0 %vm151_vm1, %v1762_v44  ;;  %v1240_v44 = vld [vmem:[%s2447_s4 + $0x10] sm:$0xff] }
  0xdf   :  { %v533_v47 = vmax.f32 %v1767_v46, 0.0  ;;  %v1238_v46 = vld [vmem:[%s2447_s4] sm:$0xff] }
  0xe0   :  { %v513_v48 = vpop.f32.mrf.mxu0 }
  0xe1   :  { %v532_v49 = vmax.f32 %v513_v48, 0.0  ;;  %1792 = vmatprep.subr.mxu1 %v533_v47  ;;  %v1370_v48 = vld [vmem:[%s2449_s6 + $0x78] sm:$0xff] }
  0xe2   :  { %v1770_v50 = vpop.f32.mrf.mxu0  ;;  %1793 = vmatpush3.msra.mxu1 %v533_v47  ;;  %v1386_v47 = vld [vmem:[%s2449_s6 + $0xf8] sm:$0xff] }
  0xe3   :  { %v535_v52 = vmax.f32 %v1770_v50, 0.0  ;;  %1794 = vmatprep.subr.mxu1 %v532_v49  ;;  %v1369_v50 = vld [vmem:[%s2449_s6 + $0x70] sm:$0xff] }
  0xe4   :  { %v523_v53 = vpop.f32.mrf.mxu0  ;;  %1795 = vmatpush3.msra.mxu1 %v532_v49  ;;  %v1385_v49 = vld [vmem:[%s2449_s6 + $0xf0] sm:$0xff] }
  0xe5   :  { %v534_v54 = vmax.f32 %v523_v53, 0.0  ;;  %1806 = vmatprep.subr.mxu1 %v146_v51  ;;  %1813 = vmatprep.subr.mxu0 %v535_v52  ;;  %v1383_v53 = vld [vmem:[%s2449_s6 + $0xe0] sm:$0xff] }
  0xe6   :  { %v1777_v55 = vpop.f32.mrf.mxu0  ;;  %1814 = vmatpush3.msra.mxu0 %v535_v52  ;;  %v1368_v52 = vld [vmem:[%s2449_s6 + $0x68] sm:$0xff] }
  0xe7   :  { %1815 = vmatprep.subr.mxu0 %v534_v54 }
  0xe8   :  { %v614_v56 = vpop.f32.mrf.mxu0  ;;  %1816 = vmatpush3.msra.mxu0 %v534_v54  ;;  %v1367_v54 = vld [vmem:[%s2449_s6 + $0x60] sm:$0xff] }
  0xe9   :  { %1796 = vmatprep.mubr.msk.f32.mxu1 %vm151_vm1, %v614_v56  ;;  %1817 = vmatprep.mubr.msk.f32.mxu0 %vm151_vm1, %v614_v56  ;;  %v1366_v56 = vld [vmem:[%s2449_s6 + $0x58] sm:$0xff] }
  0xea   :  { %1797 = vmatmul.mubr.msk.f32.vlgmr.msra.gmra.mxu1 %vm151_vm1, %v1777_v55  ;;  %1818 = vmatmul.mubr.msk.f32.vlgmr.msra.gmra.mxu0 %vm151_vm1, %v1777_v55  ;;  %v1382_v55 = vld [vmem:[%s2449_s6 + $0xd8] sm:$0xff] }
  0xeb   :  { %1807 = vmatpush3.msra.mxu1 %v146_v51  ;;  %1810 = vmatprep.mubr.msk.f32.mxu1 %vm151_vm1, %v224_v35  ;;  %v1248_v35 = vld [vmem:[%s2447_s4 + $0x50] sm:$0xff]  ;;  %v1384_v51 = vld [vmem:[%s2449_s6 + $0xe8] sm:$0xff] }
  0xec   :  { %1808 = vmatprep.subr.mxu1 %v145_v57  ;;  %1681 = vmatprep.subr.mxu0 %v1386_v47  ;;  %v1482_v47 = vld [vmem:[%s2451_s8 + $0x78] sm:$0xff] }
  0xed   :  { %1809 = vmatpush3.msra.mxu1 %v145_v57  ;;  %1682 = vmatpush3.msra.mxu0 %v1370_v48  ;;  %v1381_v57 = vld [vmem:[%s2449_s6 + $0xd0] sm:$0xff] }
  0xee   :  { %1811 = vmatmul.mubr.msk.f32.vlgmr.msra.gmra.mxu1 %vm151_vm1, %v1747_v34  ;;  %1282 = vmatprep.subr.mxu1 %v1269_v14  ;;  %v1249_v34 = vld [vmem:[%s2447_s4 + $0x58] sm:$0xff]  ;;  %vm945_vm1 = vcmask 1048519   ;;  %v1481_v48 = vld [vmem:[%s2451_s8 + $0x70] sm:$0xff] }
  0xef   :  { %1283 = vmatpush1.msra.mxu1 %v1268_v15  ;;  %1346 = vmatprep.mubr.f32.mxu1 %v1908_v43 }
  0xf0   :  { %1284 = vmatprep.subr.mxu1 %v1267_v16  ;;  %1683 = vmatprep.subr.mxu0 %v1385_v49  ;;  %v1480_v49 = vld [vmem:[%s2451_s8 + $0x68] sm:$0xff] }
  0xf1   :  { %1285 = vmatpush1.msra.mxu1 %v1266_v17  ;;  %1684 = vmatpush3.msra.mxu0 %v1369_v50  ;;  %v1479_v50 = vld [vmem:[%s2451_s8 + $0x60] sm:$0xff] }
  0xf2   :  { %1286 = vmatprep.subr.mxu1 %v1265_v18  ;;  %1685 = vmatprep.subr.mxu0 %v1384_v51  ;;  %v1478_v51 = vld [vmem:[%s2451_s8 + $0x58] sm:$0xff] }
  0xf3   :  { %1287 = vmatpush1.msra.mxu1 %v1264_v19  ;;  %1686 = vmatpush3.msra.mxu0 %v1368_v52  ;;  %v1477_v52 = vld [vmem:[%s2451_s8 + $0x50] sm:$0xff] }
  0xf4   :  { %1288 = vmatprep.subr.mxu1 %v1263_v20  ;;  %1687 = vmatprep.subr.mxu0 %v1383_v53  ;;  %v1476_v53 = vld [vmem:[%s2451_s8 + $0x48] sm:$0xff] }
  0xf5   :  { %1289 = vmatpush1.msra.mxu1 %v1262_v21  ;;  %1688 = vmatpush3.msra.mxu0 %v1367_v54  ;;  %v1475_v54 = vld [vmem:[%s2451_s8 + $0x40] sm:$0xff] }
  0xf6   :  { %1290 = vmatprep.subr.mxu1 %v1261_v22  ;;  %1689 = vmatprep.subr.mxu0 %v1382_v55  ;;  %v1474_v55 = vld [vmem:[%s2451_s8 + $0x38] sm:$0xff] }
  0xf7   :  { %1291 = vmatpush1.msra.mxu1 %v1260_v23  ;;  %1690 = vmatpush3.msra.mxu0 %v1366_v56  ;;  %v1473_v56 = vld [vmem:[%s2451_s8 + $0x30] sm:$0xff] }
  0xf8   :  { %1292 = vmatprep.subr.mxu1 %v1259_v24  ;;  %1691 = vmatprep.subr.mxu0 %v1381_v57  ;;  %v1472_v57 = vld [vmem:[%s2451_s8 + $0x28] sm:$0xff] }
  0xf9   :  { %1293 = vmatpush1.msra.mxu1 %v1258_v25 }
  0xfa   :  { %1294 = vmatprep.subr.mxu1 %v1257_v26 }
  0xfb   :  { %1295 = vmatpush1.msra.mxu1 %v1256_v27 }
  0xfc   :  { %1296 = vmatprep.subr.mxu1 %v1255_v28 }
  0xfd   :  { %1297 = vmatpush1.msra.mxu1 %v1254_v29 }
  0xfe   :  { %1298 = vmatprep.subr.mxu1 %v1253_v30 }
  0xff   :  { %1299 = vmatpush1.msra.mxu1 %v1252_v31 }
 0x100   :  { %1300 = vmatprep.subr.mxu1 %v1251_v32 }
 0x101   :  { %1301 = vmatpush1.msra.mxu1 %v1250_v33 }
 0x102   :  { %1302 = vmatprep.subr.mxu1 %v1249_v34 }
 0x103   :  { %1303 = vmatpush1.msra.mxu1 %v1248_v35 }
 0x104   :  { %1304 = vmatprep.subr.mxu1 %v1247_v36 }
 0x105   :  { %1305 = vmatpush1.msra.mxu1 %v1246_v37 }
 0x106   :  { %1306 = vmatprep.subr.mxu1 %v1245_v38  ;;  %v1374_v38 = vld [vmem:[%s2449_s6 + $0x98] sm:$0xff] }
 0x107   :  { %1307 = vmatpush1.msra.mxu1 %v1244_v39  ;;  %v1358_v39 = vld [vmem:[%s2449_s6 + $0x18] sm:$0xff] }
 0x108   :  { %1308 = vmatprep.subr.mxu1 %v1243_v40  ;;  %v1373_v40 = vld [vmem:[%s2449_s6 + $0x90] sm:$0xff] }
 0x109   :  { %1309 = vmatpush1.msra.mxu1 %v1242_v41  ;;  %v1357_v41 = vld [vmem:[%s2449_s6 + $0x10] sm:$0xff] }
 0x10a   :  { %1310 = vmatprep.subr.mxu1 %v1241_v42  ;;  %v1372_v42 = vld [vmem:[%s2449_s6 + $0x88] sm:$0xff] }
 0x10b   :  { %1311 = vmatpush1.msra.mxu1 %v1240_v44  ;;  %v1356_v44 = vld [vmem:[%s2449_s6 + $0x8] sm:$0xff] }
 0x10c   :  { %1312 = vmatprep.subr.mxu1 %v1239_v45  ;;  %v1371_v45 = vld [vmem:[%s2449_s6 + $0x80] sm:$0xff] }
 0x10d   :  { %1313 = vmatpush1.msra.mxu1 %v1238_v46  ;;  %v1355_v46 = vld [vmem:[%s2449_s6] sm:$0xff] }
 0x10e   :  { %1820 = vmatprep.subr.mxu1 %v1908_v43 }
 0x192   :  { %v1791_v58 = vpop.f32.mrf.mxu0 }
 0x194   :  { %v776_v60 = vpop.f32.mrf.mxu0 }
 0x19e   :  { %v1784_v59 = vpop.f32.mrf.mxu1  ;;  %v1805_v61 = vpop.f32.mrf.mxu0 }
 0x19f   :  { %v782_v63 = vadd.f32 %v1791_v58, %v1784_v59  ;;  %v1365_v58 = vld [vmem:[%s2449_s6 + $0x50] sm:$0xff]  ;;  %v1380_v59 = vld [vmem:[%s2449_s6 + $0xc8] sm:$0xff] }
 0x1a0   :  { %v695_v62 = vpop.f32.mrf.mxu1  ;;  %v1013_v3 = vpop.f32.mrf.mxu0  ;;  %1692 = vmatpush3.msra.mxu0 %v1365_v58  ;;  %v1272_v58 = vlaneseq }
 0x1a1   :  { %v777_v1 = vadd.f32 %v776_v60, %v695_v62  ;;  %v1364_v60 = vld [vmem:[%s2449_s6 + $0x48] sm:$0xff]  ;;  %1693 = vmatprep.subr.mxu0 %v1380_v59  ;;  %v1363_v62 = vld [vmem:[%s2449_s6 + $0x40] sm:$0xff] }
 0x1a2   :  { %1694 = vmatpush3.msra.mxu0 %v1364_v60  ;;  %v1273_v59 = vshrl.u32 %v1272_v58, 7 }
 0x1a4   :  { %v1274_v60 = vsub.s32 0, %v1273_v59 }
 0x1aa   :  { %v1798_v0 = vpop.f32.mrf.mxu1  ;;  %v1819_v6 = vpop.f32.mrf.mxu0 }
 0x1ab   :  { %v2087_v2 = vadd.f32 %v1798_v0, %v782_v63  ;;  %v1378_v63 = vld [vmem:[%s2449_s6 + $0xb8] sm:$0xff] }
 0x1ac   :  { %v857_v4 = vpop.f32.mrf.mxu1  ;;  %v1163_v12 = vpop.f32.mrf.mxu0  ;;  %v1362_v0 = vld [vmem:[%s2449_s6 + $0x38] sm:$0xff] }
 0x1ad   :  { %v2089_v5 = vadd.f32 %v857_v4, %v777_v1  ;;  %907 = vrot.lane.b32.xlu0 %v2087_v2, %s1895_s0  ;;  %v1377_v1 = vld [vmem:[%s2449_s6 + $0xb0] sm:$0xff]  ;;  %v1360_v4 = vld [vmem:[%s2449_s6 + $0x28] sm:$0xff] }
 0x1ae   :  { %v1812_v7 = vpop.f32.mrf.mxu1 }
 0x1af   :  { %v1094_v8 = vadd.f32 %v1812_v7, %v1805_v61  ;;  %876 = vrot.lane.b32.xlu1 %v2089_v5, %s1896_s3  ;;  %869 = vst.msk [vmem:[#allocation2] sm:$0x1] %vm868_vm2, %v2089_v5  ;;  %v1379_v61 = vld [vmem:[%s2449_s6 + $0xc0] sm:$0xff] }
 0x1b0   :  { %v1088_v9 = vpop.f32.mrf.mxu1  ;;  %1695 = vmatprep.subr.mxu0 %v1379_v61  ;;  %v1270_v61 = vld [vmem:[%s2448_s5] sm:$0x3] }
 0x1b1   :  { %v2096_v10 = vadd.f32 %v1819_v6, %v1094_v8  ;;  %v1089_v11 = vadd.f32 %v1088_v9, %v1013_v3  ;;  %912 = vrot.lane.b32.xlu0 %v2087_v2, %s1897_s30  ;;  %1696 = vmatpush3.msra.mxu0 %v1363_v62  ;;  %v1376_v3 = vld [vmem:[%s2449_s6 + $0xa8] sm:$0xff]  ;;  %v1359_v6 = vld [vmem:[%s2449_s6 + $0x20] sm:$0xff]  ;;  %v1278_v62 = vsub.s32 1, %v1273_v59 }
 0x1b2   :  { %1697 = vmatprep.subr.mxu0 %v1378_v63  ;;  %v1275_v63 = vrot.slane %v1270_v61, %v1274_v60 }
 0x1b3   :  { %v2099_v13 = vadd.f32 %v1163_v12, %v1089_v11  ;;  %1205 = vrot.lane.b32.xlu1 %v2096_v10, %s1895_s0  ;;  %s1905_s0 = smov 40   ;;  %1698 = vmatpush3.msra.mxu0 %v1362_v0  ;;  %v1279_v0 = vrot.slane %v1270_v61, %v1278_v62 }
 0x1b4   :  { %1699 = vmatprep.subr.mxu0 %v1377_v1 }
 0x1b5   :  { %917 = vrot.lane.b32.xlu0 %v2087_v2, %s1898_s12  ;;  %1174 = vst.msk [vmem:[#allocation2 + $0x1] sm:$0x1] %vm868_vm2, %v2099_v13  ;;  %vm1911_vm2 = vmmov 0  }
 0x1b7   :  { %1209 = vrot.lane.b32.xlu1 %v2096_v10, %s1897_s30 }
 0x1b9   :  { %922 = vrot.lane.b32.xlu0 %v2087_v2, %s1899_s13 }
 0x1bb   :  { %1213 = vrot.lane.b32.xlu1 %v2096_v10, %s1898_s12  ;;  %s1907_s12 = smov 56  }
 0x1bd   :  { %871 = vrot.lane.b32.xlu0 %v2089_v5, %s1900_s14 }
 0x1bf   :  { %1217 = vrot.lane.b32.xlu1 %v2096_v10, %s1899_s13 }
 0x1c1   :  { %881 = vrot.lane.b32.xlu0 %v2089_v5, %s1901_s15 }
 0x1c3   :  { %1221 = vrot.lane.b32.xlu1 %v2096_v10, %s1902_s18 }
 0x1c5   :  { %886 = vrot.lane.b32.xlu0 %v2089_v5, %s1903_s22 }
 0x1c7   :  { %1225 = vrot.lane.b32.xlu1 %v2096_v10, %s1904_s28 }
 0x1c9   :  { %891 = vrot.lane.b32.xlu0 %v2089_v5, %s1905_s0 }
 0x1cb   :  { %1180 = vrot.lane.b32.xlu1 %v2099_v13, %s1896_s3 }
 0x1cd   :  { %896 = vrot.lane.b32.xlu0 %v2089_v5, %s1906_s24 }
 0x1cf   :  { %1184 = vrot.lane.b32.xlu1 %v2099_v13, %s1901_s15 }
 0x1d1   :  { %901 = vrot.lane.b32.xlu0 %v2089_v5, %s1907_s12  ;;  %v1375_v5 = vld [vmem:[%s2449_s6 + $0xa0] sm:$0xff] }
 0x1d3   :  { %1188 = vrot.lane.b32.xlu1 %v2099_v13, %s1903_s22 }
 0x1d5   :  { %1176 = vrot.lane.b32.xlu0 %v2099_v13, %s1900_s14 }
 0x1d7   :  { %1192 = vrot.lane.b32.xlu1 %v2099_v13, %s1905_s0 }
 0x1d9   :  { %927 = vrot.lane.b32.xlu0 %v2087_v2, %s1902_s18 }
 0x1db   :  { %1196 = vrot.lane.b32.xlu1 %v2099_v13, %s1906_s24 }
 0x1dd   :  { %932 = vrot.lane.b32.xlu0 %v2087_v2, %s1904_s28  ;;  %s1909_s28 = smov 112  }
 0x1df   :  { %1200 = vrot.lane.b32.xlu1 %v2099_v13, %s1907_s12 }
 0x1e1   :  { %937 = vrot.lane.b32.xlu0 %v2087_v2, %s1909_s28 }
 0x1e3   :  { %1229 = vrot.lane.b32.xlu1 %v2096_v10, %s1909_s28 }
 0x1e5   :  { %942 = vrot.lane.b32.xlu0 %v2087_v2, %s1910_s29  ;;  %v1361_v2 = vld [vmem:[%s2449_s6 + $0x30] sm:$0xff] }
 0x1e6   :  { %1700 = vmatpush3.msra.mxu0 %v1361_v2 }
 0x1e7   :  { %1233 = vrot.lane.b32.xlu1 %v2096_v10, %s1910_s29  ;;  %1701 = vmatprep.subr.mxu0 %v1376_v3 }
 0x1e8   :  { %1702 = vmatpush3.msra.mxu0 %v1360_v4 }
 0x1e9   :  { %1703 = vmatprep.subr.mxu0 %v1375_v5 }
 0x1ea   :  { %1704 = vmatpush3.msra.mxu0 %v1359_v6 }
 0x1eb   :  { %1705 = vmatprep.subr.mxu0 %v1374_v38 }
 0x1ec   :  { %1706 = vmatpush3.msra.mxu0 %v1358_v39 }
 0x1ed   :  { %1707 = vmatprep.subr.mxu0 %v1373_v40 }
 0x1ee   :  { %1708 = vmatpush3.msra.mxu0 %v1357_v41 }
 0x1ef   :  { %1709 = vmatprep.subr.mxu0 %v1372_v42 }
 0x1f0   :  { %1710 = vmatpush3.msra.mxu0 %v1356_v44 }
 0x1f1   :  { %1711 = vmatprep.subr.mxu0 %v1371_v45 }
 0x1f2   :  { %1712 = vmatpush3.msra.mxu0 %v1355_v46 }
 0x21f   :  { %v908_v7 = vpop.permute.xlu0 %907 }
 0x221   :  { %v877_v8 = vpop.permute.xlu1 %876 }
 0x223   :  { %v913_v9 = vpop.permute.xlu0 %912 }
 0x225   :  { %v1206_v10 = vpop.permute.xlu1 %1205 }
 0x227   :  { %v918_v11 = vpop.permute.xlu0 %917 }
 0x229   :  { %v1210_v12 = vpop.permute.xlu1 %1209 }
 0x22b   :  { %v923_v13 = vpop.permute.xlu0 %922 }
 0x22d   :  { %v1214_v14 = vpop.permute.xlu1 %1213 }
 0x22f   :  { %v872_v15 = vpop.permute.xlu0 %871 }
 0x230   :  { %875 = vst.msk [vmem:[#allocation2 - $0x1] sm:$0x2] %vm874_vm3, %v872_v15 }
 0x231   :  { %v1218_v16 = vpop.permute.xlu1 %1217  ;;  %880 = vst.msk [vmem:[#allocation2 - $0x2] sm:$0x4] %vm879_vm4, %v877_v8  ;;  %v1470_v8 = vld [vmem:[%s2451_s8 + $0x18] sm:$0xff] }
 0x233   :  { %v882_v17 = vpop.permute.xlu0 %881 }
 0x234   :  { %885 = vst.msk [vmem:[#allocation2 - $0x3] sm:$0x8] %vm884_vm5, %v882_v17 }
 0x235   :  { %v1222_v18 = vpop.permute.xlu1 %1221 }
 0x237   :  { %v887_v19 = vpop.permute.xlu0 %886 }
 0x238   :  { %890 = vst.msk [vmem:[#allocation2 - $0x4] sm:$0x10] %vm889_vm6, %v887_v19 }
 0x239   :  { %v1226_v20 = vpop.permute.xlu1 %1225 }
 0x23b   :  { %v892_v21 = vpop.permute.xlu0 %891 }
 0x23c   :  { %895 = vst.msk [vmem:[#allocation2 - $0x5] sm:$0x20] %vm894_vm7, %v892_v21 }
 0x23d   :  { %v1181_v22 = vpop.permute.xlu1 %1180 }
 0x23f   :  { %v897_v23 = vpop.permute.xlu0 %896 }
 0x240   :  { %900 = vst.msk [vmem:[#allocation2 - $0x6] sm:$0x40] %vm899_vm8, %v897_v23 }
 0x241   :  { %v1185_v24 = vpop.permute.xlu1 %1184 }
 0x243   :  { %v902_v25 = vpop.permute.xlu0 %901 }
 0x244   :  { %905 = vst.msk [vmem:[#allocation2 - $0x7] sm:$0x80] %vm904_vm9, %v902_v25 }
 0x245   :  { %911 = vst.msk [vmem:[#allocation2] sm:$0x1] %vm910_vm10, %v908_v7  ;;  %v1189_v26 = vpop.permute.xlu1 %1188  ;;  %v1471_v7 = vld [vmem:[%s2451_s8 + $0x20] sm:$0xff] }
 0x246   :  { %916 = vst.msk [vmem:[#allocation2 - $0x1] sm:$0x2] %vm915_vm11, %v913_v9  ;;  %v1469_v9 = vld [vmem:[%s2451_s8 + $0x10] sm:$0xff] }
 0x247   :  { %v1177_v27 = vpop.permute.xlu0 %1176  ;;  %921 = vst.msk [vmem:[#allocation2 - $0x2] sm:$0x4] %vm920_vm12, %v918_v11  ;;  %v1467_v11 = vld [vmem:[%s2451_s8] sm:$0xff] }
 0x248   :  { %1179 = vst.msk [vmem:[#allocation2] sm:$0x2] %vm874_vm3, %v1177_v27  ;;  %vm1465_vm3 = vcmask 615424  }
 0x249   :  { %926 = vst.msk [vmem:[#allocation2 - $0x3] sm:$0x8] %vm925_vm13, %v923_v13  ;;  %v1193_v28 = vpop.permute.xlu1 %1192  ;;  %v1628_v13 = vld [vmem:[%s2450_s7] ss:$0 sm:$0xff] }
 0x24a   :  { %1183 = vst.msk [vmem:[#allocation2 - $0x1] sm:$0x4] %vm879_vm4, %v1181_v22 }
 0x24b   :  { %1187 = vst.msk [vmem:[#allocation2 - $0x2] sm:$0x8] %vm884_vm5, %v1185_v24  ;;  %v928_v29 = vpop.permute.xlu0 %927 }
 0x24c   :  { %1191 = vst.msk [vmem:[#allocation2 - $0x3] sm:$0x10] %vm889_vm6, %v1189_v26 }
 0x24d   :  { %1195 = vst.msk [vmem:[#allocation2 - $0x4] sm:$0x20] %vm894_vm7, %v1193_v28  ;;  %v1197_v30 = vpop.permute.xlu1 %1196 }
 0x24e   :  { %931 = vst.msk [vmem:[#allocation2 - $0x4] sm:$0x10] %vm930_vm14, %v928_v29 }
 0x24f   :  { %1199 = vst.msk [vmem:[#allocation2 - $0x5] sm:$0x40] %vm899_vm8, %v1197_v30  ;;  %v933_v31 = vpop.permute.xlu0 %932 }
 0x250   :  { %936 = vst.msk [vmem:[#allocation2 - $0x5] sm:$0x20] %vm935_vm15, %v933_v31 }
 0x251   :  { %v1201_v32 = vpop.permute.xlu1 %1200 }
 0x252   :  { %1203 = vst.msk [vmem:[#allocation2 - $0x6] sm:$0x80] %vm904_vm9, %v1201_v32 }
 0x253   :  { %1208 = vst.msk [vmem:[#allocation2 + $0x1] sm:$0x1] %vm910_vm10, %v1206_v10  ;;  %v938_v33 = vpop.permute.xlu0 %937  ;;  %v1468_v10 = vld [vmem:[%s2451_s8 + $0x8] sm:$0xff]  ;;  %s1570_s8 = sshll.u32 %s1912_s23, 4  ;;  %s1571_s8 = int_to_ptr.vmem [resolvable:$true] %s1570_s8 }
 0x254   :  { %1212 = vst.msk [vmem:[#allocation2] sm:$0x2] %vm915_vm11, %v1210_v12  ;;  %s1873_s28 = scalar_lea.vmem %s1571_s8, 32  ;;  %p1878_p1 = scmp.lt.s32.totalorder %s1571_s8, %s1571_s8 }
 0x255   :  { %941 = vst.msk [vmem:[#allocation2 - $0x6] sm:$0x40] %vm940_vm0, %v938_v33  ;;  %v1230_v34 = vpop.permute.xlu1 %1229  ;;  %p1874_p0 = scmp.ne.s32.totalorder %s1571_s8, %s1873_s28  ;;  %p1879_p2 = scmp.lt.s32.totalorder %s1873_s28, %s1873_s28 }
 0x256   :  { %1216 = vst.msk [vmem:[#allocation2 - $0x1] sm:$0x4] %vm920_vm12, %v1214_v14 }
 0x257   :  { %1220 = vst.msk [vmem:[#allocation2 - $0x2] sm:$0x8] %vm925_vm13, %v1218_v16  ;;  %v943_v35 = vpop.permute.xlu0 %942  ;;  %p1880_p3 = por %p1879_p2, %p1878_p1 }
 0x258   :  { %1224 = vst.msk [vmem:[#allocation2 - $0x3] sm:$0x10] %vm930_vm14, %v1222_v18 }
 0x259   :  { %1228 = vst.msk [vmem:[#allocation2 - $0x4] sm:$0x20] %vm935_vm15, %v1226_v20  ;;  %v1234_v36 = vpop.permute.xlu1 %1233  ;;  %p1881_p4 = pnand %p1880_p3, %p1874_p0 }
 0x25a   :  { %946 = vst.msk [vmem:[#allocation2 - $0x7] sm:$0x80] %vm945_vm1, %v943_v35 }
 0x25b   :  { %1232 = vst.msk [vmem:[#allocation2 - $0x5] sm:$0x40] %vm940_vm0, %v1230_v34 }
 0x25c   :  { %1236 = vst.msk [vmem:[#allocation2 - $0x6] sm:$0x80] %vm945_vm1, %v1234_v36 }
 0x263   :  { %v1237_v37 = vld [vmem:[#allocation2] sm:$0x3] }
 0x264   :  { %1347 = vmatmul.mubr.f32.vlgmr.msra.gmra.mxu1 %v1237_v37 }
 0x265   :  { %1821 = vmatpush3.msra.mxu1 %v1482_v47  ;;  %1852 = vmatprep.mubr.msk.f32.mxu1 %vm1911_vm2, %v1908_v43 }
 0x266   :  { %1822 = vmatprep.subr.mxu1 %v1908_v43 }
 0x267   :  { %1823 = vmatpush3.msra.mxu1 %v1481_v48 }
 0x268   :  { %1824 = vmatprep.subr.mxu1 %v1908_v43 }
 0x269   :  { %1825 = vmatpush3.msra.mxu1 %v1480_v49 }
 0x26a   :  { %1826 = vmatprep.subr.mxu1 %v1908_v43 }
 0x26b   :  { %1827 = vmatpush3.msra.mxu1 %v1479_v50 }
 0x26c   :  { %1828 = vmatprep.subr.mxu1 %v1908_v43 }
 0x26d   :  { %1829 = vmatpush3.msra.mxu1 %v1478_v51 }
 0x26e   :  { %1830 = vmatprep.subr.mxu1 %v1908_v43 }
 0x26f   :  { %1831 = vmatpush3.msra.mxu1 %v1477_v52 }
 0x270   :  { %1832 = vmatprep.subr.mxu1 %v1908_v43 }
 0x271   :  { %1833 = vmatpush3.msra.mxu1 %v1476_v53 }
 0x272   :  { %1834 = vmatprep.subr.mxu1 %v1908_v43 }
 0x273   :  { %1835 = vmatpush3.msra.mxu1 %v1475_v54 }
 0x274   :  { %1836 = vmatprep.subr.mxu1 %v1908_v43 }
 0x275   :  { %1837 = vmatpush3.msra.mxu1 %v1474_v55 }
 0x276   :  { %1838 = vmatprep.subr.mxu1 %v1908_v43 }
 0x277   :  { %1839 = vmatpush3.msra.mxu1 %v1473_v56 }
 0x278   :  { %1840 = vmatprep.subr.mxu1 %v1908_v43 }
 0x279   :  { %1841 = vmatpush3.msra.mxu1 %v1472_v57 }
 0x27a   :  { %1842 = vmatprep.subr.mxu1 %v1908_v43 }
 0x27b   :  { %1843 = vmatpush3.msra.mxu1 %v1471_v7 }
 0x27c   :  { %1844 = vmatprep.subr.mxu1 %v1908_v43 }
 0x27d   :  { %1845 = vmatpush3.msra.mxu1 %v1470_v8 }
 0x27e   :  { %1846 = vmatprep.subr.mxu1 %v1908_v43 }
 0x27f   :  { %1847 = vmatpush3.msra.mxu1 %v1469_v9 }
 0x280   :  { %1848 = vmatprep.subr.mxu1 %v1908_v43 }
 0x281   :  { %1849 = vmatpush3.msra.mxu1 %v1468_v10 }
 0x282   :  { %1850 = vmatprep.subr.mxu1 %v1908_v43 }
 0x283   :  { %1851 = vmatpush3.msra.mxu1 %v1467_v11 }
 0x324   :  { %v1348_v1 = vpop.f32.mrf.mxu1 }
 0x325   :  { %v1349_v2 = vadd.f32 %v1348_v1, %v1275_v63 }
 0x326   :  { %v1350_v3 = vpop.f32.mrf.mxu1 }
 0x327   :  { %v1351_v4 = vadd.f32 %v1350_v3, %v1279_v0  ;;  %v1353_v6 = vmax.f32 %v1349_v2, 0.0 }
 0x329   :  { %v1354_v5 = vmax.f32 %v1351_v4, 0.0 }
 0x32b   :  { %1458 = vmatprep.mubr.f32.mxu0 %v1354_v5 }
 0x32c   :  { %1459 = vmatmul.mubr.f32.vlgmr.msra.gmra.mxu0 %v1353_v6 }
 0x3ec   :  { %v1713_v12 = vpop.f32.mrf.mxu0 }
 0x3ee   :  { %v1714_v14 = vpop.f32.mrf.mxu0 }
 0x3ef   :  { %v1715_v15 = vadd.f32 %v1714_v14, %v1713_v12 }
 0x3f1   :  { %v1461_v16 = vadd.f32 %v1715_v15, %v1628_v13 }
 0x3f3   :  { %v1464_v17 = vmax.f32 %v1461_v16, 0.0 }
 0x3f5   :  { %1853 = vmatmul.mubr.f32.vlgmr.msra.gmra.mxu1 %v1464_v17  ;;  %1466 = vst.msk [vmem:[#allocation4] sm:$0x3] %vm1465_vm3, %v1464_v17 }
 0x3f6   :  { %1884 = shalt.err (!%p1881_p4)
}
 0x3f7   :  { %1573 = dma.vmem_to_hbm [thread:$0]  %s1571_s8, 32, %s2454_s11, [#allocation5]   ;;  %v1629_v43 = vld [vmem:[#allocation3] ss:$0 sm:$0xff]  ;;  %vm1560_vm4 = vcmask 1024  }
 0x4b5   :  { %v1556_v18 = vpop.f32.mrf.mxu1 }
 0x4b6   :  { %v1557_v19 = vadd.f32 %v1629_v43, %v1556_v18 }
 0x4b7   :  { %v1854_v20 = vpop.f32.mrf.mxu1 }
 0x4b8   :  { %1561 = vst.msk [vmem:[%s2453_s10] sm:$0x3] %vm1560_vm4, %v1557_v19 }
 0x4b9   :  { %1893 = dma.done.wait [#allocation5], 32  }
 0x4ba   :  { %1894 = vsyncadd [#allocation5], 4294967264 }
 0x4bb   :  { %1579 = vsyncpa [#allocation5], 1 }

</bundles_post_ra>
